<compile_context>
chip_gen: v7x
topology: tpu7x:2x2x1
jax: 0.10.0
libtpu: 0.0.40
codegen_flags: <defaults>
</compile_context>

<pallas_src>
import functools

import jax
import jax.numpy as jnp
from jax.experimental import pallas as pl
from jax.experimental.pallas import tpu as pltpu


def _bn_fold(gamma, beta, mean, var, eps=1e-5):
    """Fold BN(gamma, beta, mean, var) into y = x*scale + shift (per channel)."""
    scale = gamma / jnp.sqrt(var + eps)
    shift = beta - mean * scale
    return scale.astype(jnp.float32), shift.astype(jnp.float32)


def _ddfm_kernel(p_ref, i_ref, d_ref, vec_ref, wp_ref, wi_ref, sh2_ref, o_ref, *, ew_dtype):
    vec = vec_ref[...].astype(ew_dtype)            # (Cin, 4) packed BN1 constants
    sc1p, sh1p = vec[:, 0:1], vec[:, 1:2]
    sc1i, sh1i = vec[:, 2:3], vec[:, 3:4]
    sh2 = sh2_ref[...]                             # (Cout, 1) f32 combined BN2 shift
    wp = wp_ref[...]                               # (Cout, Cin) bf16 (BN2p scale folded)
    wi = wi_ref[...]                               # (Cout, Cin) bf16 (BN2i scale folded)

    nb = p_ref.shape[0]
    for b in range(nb):                            # static unroll; nb is small
        p = p_ref[b].astype(ew_dtype)              # (Cin, t_hw)
        ii = i_ref[b].astype(ew_dtype)
        d = d_ref[b].astype(ew_dtype)

        edge = jax.nn.sigmoid(d)                   # EUP slot
        x_p = (1.0 - edge) * ii + p                # (1 - edge_att) * i + p
        x_i = ii + edge * p                        # i + edge_att * p

        # folded BN1 affine (per-channel, broadcast over lanes) + ReLU, then bf16 for MXU
        y_p = jnp.maximum(x_p * sc1p + sh1p, 0.0).astype(jnp.bfloat16)
        y_i = jnp.maximum(x_i * sc1i + sh1i, 0.0).astype(jnp.bfloat16)

        # two accumulated bf16 MXU dots replace the old concat + single dot
        z = jnp.dot(wp, y_p, preferred_element_type=jnp.float32)
        z = z + jnp.dot(wi, y_i, preferred_element_type=jnp.float32)
        o_ref[b] = (z + sh2).astype(o_ref.dtype)


def _vmem_capacity_bytes():
    try:
        return int(pltpu.get_tpu_info().vmem_capacity_bytes)
    except Exception:
        return 64 << 20   # conservative default (v7x per-TC VMEM)


def _use_bf16_elementwise():
    try:
        kind = jax.devices()[0].device_kind.lower()
    except Exception:
        return False
    return ("v6" in kind) or ("v7" in kind)   # bf16 VALU only on v6e / v7x


def _pick_tiles(N, HW, Cin, Cout, vmem_cap, max_tile=4096):
    """Pick (batch block nb, spatial tile t_hw) under a generation-aware VMEM budget."""
    # Bytes per spatial column per batch element in one grid step:
    #   bf16 input blocks (double-buffered) + f32 output block (double-buffered)
    #   + f32 in-kernel temporaries (edge, x_p, x_i, y_p, y_i, z, ...).
    per_col = (3 * Cin * 2) * 2 + (Cout * 4) * 2 + (6 * Cin + 2 * Cout) * 4
    const_bytes = (2 * Cout * Cin * 2 + (Cin + Cout) * 128 * 4) * 2
    budget = max(int(vmem_cap * 0.45) - const_bytes, 1 << 20)
    cap_cols = max(budget // per_col, 128)

    if HW >= 512 or N == 1:
        nb = 1
        t = min(max_tile, cap_cols, HW)
        t_hw = HW if t >= HW else max(128, (t // 128) * 128)   # ragged last tile via cdiv
    else:
        # Small spatial extent: pack batch elements per block for bigger per-step DMAs,
        # but keep >=2 grid programs along the batch axis when possible (v7x megacore).
        t_hw = HW
        want = max(1, min(N, -(-512 // HW), cap_cols // max(HW, 1)))
        nb = 1
        for cand in range(min(want, N), 0, -1):
            if N % cand == 0 and N // cand >= 2:
                nb = cand
                break
    return nb, t_hw


@functools.partial(jax.jit, static_argnames=("nb", "t_hw", "ew_bf16", "vmem_limit"))
def _ddfm_impl(p, i, d, params, *, nb, t_hw, ew_bf16, vmem_limit):
    N, Cin, H, W = p.shape
    Cout = params["w_p"].shape[1]
    HW = H * W

    # NCHW -> (N, Cin, H*W): free reshape (contiguous). Activations stream as bf16.
    p3 = p.reshape(N, Cin, HW).astype(jnp.bfloat16)
    i3 = i.reshape(N, Cin, HW).astype(jnp.bfloat16)
    d3 = d.reshape(N, Cin, HW).astype(jnp.bfloat16)

    # Fold the four BatchNorms into per-channel scale/shift.
    sc1p, sh1p = _bn_fold(params["bn1p_g"], params["bn1p_b"], params["bn1p_m"], params["bn1p_v"])
    sc1i, sh1i = _bn_fold(params["bn1i_g"], params["bn1i_b"], params["bn1i_m"], params["bn1i_v"])
    sc2p, sh2p = _bn_fold(params["bn2p_g"], params["bn2p_b"], params["bn2p_m"], params["bn2p_v"])
    sc2i, sh2i = _bn_fold(params["bn2i_g"], params["bn2i_b"], params["bn2i_m"], params["bn2i_v"])

    # BN2 scale folded into transposed conv weights; two separate bf16 weight mats.
    wp = (params["w_p"].astype(jnp.float32).T * sc2p[:, None]).astype(jnp.bfloat16)  # (Cout, Cin)
    wi = (params["w_i"].astype(jnp.float32).T * sc2i[:, None]).astype(jnp.bfloat16)  # (Cout, Cin)
    sh2 = (sh2p + sh2i).reshape(Cout, 1)                                             # combined BN2 shift
    vec = jnp.stack([sc1p, sh1p, sc1i, sh1i], axis=1)                                # (Cin, 4)

    grid = (pl.cdiv(N, nb), pl.cdiv(HW, t_hw))

    in_spec = pl.BlockSpec((nb, Cin, t_hw), lambda n, s: (n, 0, s))
    out_spec = pl.BlockSpec((nb, Cout, t_hw), lambda n, s: (n, 0, s))
    vec_spec = pl.BlockSpec((Cin, 4), lambda n, s: (0, 0))
    w_spec = pl.BlockSpec((Cout, Cin), lambda n, s: (0, 0))
    sh2_spec = pl.BlockSpec((Cout, 1), lambda n, s: (0, 0))

    kernel = functools.partial(
        _ddfm_kernel, ew_dtype=jnp.bfloat16 if ew_bf16 else jnp.float32)

    out_rows = pl.pallas_call(
        kernel,
        out_shape=jax.ShapeDtypeStruct((N, Cout, HW), jnp.float32),
        grid_spec=pltpu.PrefetchScalarGridSpec(
            num_scalar_prefetch=0,
            grid=grid,
            in_specs=[in_spec, in_spec, in_spec, vec_spec, w_spec, w_spec, sh2_spec],
            out_specs=out_spec),
        compiler_params=pltpu.CompilerParams(
            dimension_semantics=("parallel", "parallel"),
            vmem_limit_bytes=vmem_limit),
    )(p3, i3, d3, vec, wp, wi, sh2)

    # (N, Cout, H*W) -> NCHW: free reshape. Output stays f32 (module semantics).
    return out_rows.reshape(N, Cout, H, W)


def ddfm_v2_forward(p, i, d, params):
    """p, i, d: NCHW float32 arrays of identical shape (N, Cin, H, W)."""
    N, Cin, H, W = p.shape
    Cout = params["w_p"].shape[1]
    HW = H * W

    vmem_cap = _vmem_capacity_bytes()
    nb, t_hw = _pick_tiles(N, HW, Cin, Cout, vmem_cap)
    ew_bf16 = _use_bf16_elementwise()

    # Explicit VMEM limit: double-buffered I/O blocks + temporaries + constants + headroom,
    # never above the chip's physical per-TC capacity (64 MiB on v7x, 128 MiB on v5e/v6e).
    io_bytes = (3 * Cin * 2 + Cout * 4) * nb * t_hw * 2
    tmp_bytes = (6 * Cin + 2 * Cout) * 4 * t_hw
    const_bytes = (2 * Cout * Cin * 2 + (Cin + Cout) * 128 * 4) * 2
    vmem_limit = int(min(max(io_bytes + tmp_bytes + const_bytes + (4 << 20), 32 << 20),
                         max(vmem_cap - (4 << 20), 32 << 20)))

    return _ddfm_impl(p, i, d, params, nb=nb, t_hw=t_hw, ew_bf16=ew_bf16,
                      vmem_limit=vmem_limit)


def ddfm_v2_reference(p, i, d, params, eps=1e-5):
    """Pure-JAX reference (NCHW), mirrors the PyTorch forward in eval mode."""
    edge = jax.nn.sigmoid(d)

    def branch(x, g1, b1, m1, v1, w, g2, b2, m2, v2):
        y = (x - m1[None, :, None, None]) / jnp.sqrt(v1[None, :, None, None] + eps)
        y = y * g1[None, :, None, None] + b1[None, :, None, None]
        y = jnp.maximum(y, 0.0)
        y = jnp.einsum("nchw,co->nohw", y, w)   # 1x1 conv, no bias
        y = (y - m2[None, :, None, None]) / jnp.sqrt(v2[None, :, None, None] + eps)
        y = y * g2[None, :, None, None] + b2[None, :, None, None]
        return y

    p_add = branch((1.0 - edge) * i + p,
                   params["bn1p_g"], params["bn1p_b"], params["bn1p_m"], params["bn1p_v"],
                   params["w_p"],
                   params["bn2p_g"], params["bn2p_b"], params["bn2p_m"], params["bn2p_v"])
    i_add = branch(i + edge * p,
                   params["bn1i_g"], params["bn1i_b"], params["bn1i_m"], params["bn1i_v"],
                   params["w_i"],
                   params["bn2i_g"], params["bn2i_b"], params["bn2i_m"], params["bn2i_v"])
    return p_add + i_add


def init_params(key, in_channels, out_channels):
    """Deterministic synthetic parameters matching DDFMv2.__init__ shapes."""
    ks = jax.random.split(key, 12)
    # Conv2d(in, out, k=1, bias=False): kaiming_normal fan_in, relu
    std = (2.0 / in_channels) ** 0.5
    w_p = jax.random.normal(ks[0], (in_channels, out_channels), jnp.float32) * std
    w_i = jax.random.normal(ks[1], (in_channels, out_channels), jnp.float32) * std

    def bn(kg, kb, km, kv, c):
        g = 1.0 + 0.1 * jax.random.normal(kg, (c,), jnp.float32)
        b = 0.1 * jax.random.normal(kb, (c,), jnp.float32)
        m = 0.1 * jax.random.normal(km, (c,), jnp.float32)
        v = 1.0 + 0.1 * jax.random.uniform(kv, (c,), jnp.float32)
        return g, b, m, v

    bn1p = bn(ks[2], ks[3], ks[4], ks[5], in_channels)
    bn1i = bn(ks[6], ks[7], ks[8], ks[9], in_channels)
    bn2p = bn(*jax.random.split(ks[10], 4), out_channels)
    bn2i = bn(*jax.random.split(ks[11], 4), out_channels)

    return {
        "w_p": w_p, "w_i": w_i,
        "bn1p_g": bn1p[0], "bn1p_b": bn1p[1], "bn1p_m": bn1p[2], "bn1p_v": bn1p[3],
        "bn1i_g": bn1i[0], "bn1i_b": bn1i[1], "bn1i_m": bn1i[2], "bn1i_v": bn1i[3],
        "bn2p_g": bn2p[0], "bn2p_b": bn2p[1], "bn2p_m": bn2p[2], "bn2p_v": bn2p[3],
        "bn2i_g": bn2i[0], "bn2i_b": bn2i[1], "bn2i_m": bn2i[2], "bn2i_v": bn2i[3],
    }


if __name__ == "__main__":
    key = jax.random.PRNGKey(0)
    N, Cin, Cout, H, W = 2, 8, 16, 16, 16   # HW = 256; grid (2, 1), both axes parallel

    kp, ki, kd, kparam = jax.random.split(key, 4)
    p = jax.random.normal(kp, (N, Cin, H, W), jnp.float32)
    i = jax.random.normal(ki, (N, Cin, H, W), jnp.float32)
    d = jax.random.normal(kd, (N, Cin, H, W), jnp.float32)

    params = init_params(kparam, Cin, Cout)

    out = jax.block_until_ready(ddfm_v2_forward(p, i, d, params))
    assert out.shape == (N, Cout, H, W), out.shape

    # Reference computed on bf16-rounded inputs (the kernel streams activations as bf16);
    # remaining error comes from bf16 weights / bf16 MXU operands with f32 accumulation.
    rnd = lambda x: x.astype(jnp.bfloat16).astype(jnp.float32)
    ref = ddfm_v2_reference(rnd(p), rnd(i), rnd(d), params)
    max_err = float(jnp.max(jnp.abs(out - ref)))
    scale = float(jnp.max(jnp.abs(ref)))
    assert max_err <= 5e-2 * max(scale, 1.0), f"mismatch vs reference: {max_err} (scale {scale})"

    print("KERNEL_OK")
</pallas_src>

<mosaic_0001>
module attributes {stable_mosaic.version = 11 : i64} {
  func.func @_ddfm_kernel(%arg0: i32, %arg1: i32, %arg2: memref<1x8x256xbf16, #tpu.memory_space<vmem>>, %arg3: memref<1x8x256xbf16, #tpu.memory_space<vmem>>, %arg4: memref<1x8x256xbf16, #tpu.memory_space<vmem>>, %arg5: memref<8x4xf32, #tpu.memory_space<vmem>>, %arg6: memref<16x8xbf16, #tpu.memory_space<vmem>>, %arg7: memref<16x8xbf16, #tpu.memory_space<vmem>>, %arg8: memref<16x1xf32, #tpu.memory_space<vmem>>, %arg9: memref<1x16x256xf32, #tpu.memory_space<vmem>>) attributes {dimension_semantics = [#tpu.dimension_semantics<parallel>, #tpu.dimension_semantics<parallel>], iteration_bounds = array<i64: 2, 1>, scalar_prefetch = 0 : i64, scratch_operands = 0 : i64, tpu.core_type = #tpu.core_type<tc>, window_params = [{transform_indices = @transform_0, window_bounds = array<i64: 1, 8, 256>}, {transform_indices = @transform_1, window_bounds = array<i64: 1, 8, 256>}, {transform_indices = @transform_2, window_bounds = array<i64: 1, 8, 256>}, {pipeline_mode = #tpu.pipeline_mode<synchronous>, transform_indices = @transform_3, window_bounds = array<i64: 8, 4>}, {pipeline_mode = #tpu.pipeline_mode<synchronous>, transform_indices = @transform_4, window_bounds = array<i64: 16, 8>}, {pipeline_mode = #tpu.pipeline_mode<synchronous>, transform_indices = @transform_5, window_bounds = array<i64: 16, 8>}, {pipeline_mode = #tpu.pipeline_mode<synchronous>, transform_indices = @transform_6, window_bounds = array<i64: 16, 1>}, {transform_indices = @transform_7, window_bounds = array<i64: 1, 16, 256>}]} {
    %c0 = arith.constant 0 : index
    %c0_0 = arith.constant 0 : index
    %0 = vector.load %arg5[%c0, %c0_0] : memref<8x4xf32, #tpu.memory_space<vmem>>, vector<8x4xf32>
    %1 = vector.extract_strided_slice %0 {offsets = [0, 0], sizes = [8, 1], strides = [1, 1]} : vector<8x4xf32> to vector<8x1xf32>
    %2 = vector.extract_strided_slice %0 {offsets = [0, 1], sizes = [8, 1], strides = [1, 1]} : vector<8x4xf32> to vector<8x1xf32>
    %3 = vector.extract_strided_slice %0 {offsets = [0, 2], sizes = [8, 1], strides = [1, 1]} : vector<8x4xf32> to vector<8x1xf32>
    %4 = vector.extract_strided_slice %0 {offsets = [0, 3], sizes = [8, 1], strides = [1, 1]} : vector<8x4xf32> to vector<8x1xf32>
    %c0_1 = arith.constant 0 : index
    %c0_2 = arith.constant 0 : index
    %5 = vector.load %arg8[%c0_1, %c0_2] : memref<16x1xf32, #tpu.memory_space<vmem>>, vector<16x1xf32>
    %c0_3 = arith.constant 0 : index
    %c0_4 = arith.constant 0 : index
    %6 = vector.load %arg6[%c0_3, %c0_4] : memref<16x8xbf16, #tpu.memory_space<vmem>>, vector<16x8xbf16>
    %c0_5 = arith.constant 0 : index
    %c0_6 = arith.constant 0 : index
    %7 = vector.load %arg7[%c0_5, %c0_6] : memref<16x8xbf16, #tpu.memory_space<vmem>>, vector<16x8xbf16>
    %c0_7 = arith.constant 0 : index
    %c0_8 = arith.constant 0 : index
    %c0_9 = arith.constant 0 : index
    %8 = vector.load %arg2[%c0_7, %c0_8, %c0_9] : memref<1x8x256xbf16, #tpu.memory_space<vmem>>, vector<1x8x256xbf16>
    %9 = vector.shape_cast %8 : vector<1x8x256xbf16> to vector<8x256xbf16>
    %10 = arith.extf %9 : vector<8x256xbf16> to vector<8x256xf32>
    %c0_10 = arith.constant 0 : index
    %c0_11 = arith.constant 0 : index
    %c0_12 = arith.constant 0 : index
    %11 = vector.load %arg3[%c0_10, %c0_11, %c0_12] : memref<1x8x256xbf16, #tpu.memory_space<vmem>>, vector<1x8x256xbf16>
    %12 = vector.shape_cast %11 : vector<1x8x256xbf16> to vector<8x256xbf16>
    %13 = arith.extf %12 : vector<8x256xbf16> to vector<8x256xf32>
    %c0_13 = arith.constant 0 : index
    %c0_14 = arith.constant 0 : index
    %c0_15 = arith.constant 0 : index
    %14 = vector.load %arg4[%c0_13, %c0_14, %c0_15] : memref<1x8x256xbf16, #tpu.memory_space<vmem>>, vector<1x8x256xbf16>
    %15 = vector.shape_cast %14 : vector<1x8x256xbf16> to vector<8x256xbf16>
    %16 = arith.extf %15 : vector<8x256xbf16> to vector<8x256xf32>
    %17 = arith.negf %16 : vector<8x256xf32>
    %18 = math.exp %17 : vector<8x256xf32>
    %cst = arith.constant 1.000000e+00 : f32
    %19 = vector.broadcast %cst : f32 to vector<8x256xf32>
    %20 = arith.addf %19, %18 : vector<8x256xf32>
    %21 = arith.divf %19, %20 : vector<8x256xf32>
    %cst_16 = arith.constant 1.000000e+00 : f32
    %22 = vector.broadcast %cst_16 : f32 to vector<8x256xf32>
    %23 = arith.subf %22, %21 : vector<8x256xf32>
    %24 = arith.mulf %23, %13 : vector<8x256xf32>
    %25 = arith.addf %24, %10 : vector<8x256xf32>
    %26 = arith.mulf %21, %10 : vector<8x256xf32>
    %27 = arith.addf %13, %26 : vector<8x256xf32>
    %28 = vector.broadcast %1 : vector<8x1xf32> to vector<8x256xf32>
    %29 = arith.mulf %25, %28 : vector<8x256xf32>
    %30 = vector.broadcast %2 : vector<8x1xf32> to vector<8x256xf32>
    %31 = arith.addf %29, %30 : vector<8x256xf32>
    %cst_17 = arith.constant 0.000000e+00 : f32
    %32 = vector.broadcast %cst_17 : f32 to vector<8x256xf32>
    %33 = arith.maximumf %31, %32 : vector<8x256xf32>
    %34 = arith.truncf %33 : vector<8x256xf32> to vector<8x256xbf16>
    %35 = vector.broadcast %3 : vector<8x1xf32> to vector<8x256xf32>
    %36 = arith.mulf %27, %35 : vector<8x256xf32>
    %37 = vector.broadcast %4 : vector<8x1xf32> to vector<8x256xf32>
    %38 = arith.addf %36, %37 : vector<8x256xf32>
    %cst_18 = arith.constant 0.000000e+00 : f32
    %39 = vector.broadcast %cst_18 : f32 to vector<8x256xf32>
    %40 = arith.maximumf %38, %39 : vector<8x256xf32>
    %41 = arith.truncf %40 : vector<8x256xf32> to vector<8x256xbf16>
    %cst_19 = arith.constant dense<0.000000e+00> : vector<16x256xf32>
    %42 = tpu.matmul %6, %34, %cst_19 {dimension_numbers = #tpu.dot_dimension_numbers<[1], [0], [0], [1], [0, 0, 1, 1], [], []>} : vector<16x8xbf16>, vector<8x256xbf16>, vector<16x256xf32> -> vector<16x256xf32>
    %cst_20 = arith.constant dense<0.000000e+00> : vector<16x256xf32>
    %43 = tpu.matmul %7, %41, %cst_20 {dimension_numbers = #tpu.dot_dimension_numbers<[1], [0], [0], [1], [0, 0, 1, 1], [], []>} : vector<16x8xbf16>, vector<8x256xbf16>, vector<16x256xf32> -> vector<16x256xf32>
    %44 = arith.addf %42, %43 : vector<16x256xf32>
    %45 = vector.broadcast %5 : vector<16x1xf32> to vector<16x256xf32>
    %46 = arith.addf %44, %45 : vector<16x256xf32>
    %c0_21 = arith.constant 0 : index
    %c0_22 = arith.constant 0 : index
    %c0_23 = arith.constant 0 : index
    %47 = vector.load %arg9[%c0_21, %c0_22, %c0_23] : memref<1x16x256xf32, #tpu.memory_space<vmem>>, vector<1x16x256xf32>
    %48 = vector.shape_cast %47 : vector<1x16x256xf32> to vector<16x256xf32>
    %49 = vector.shape_cast %46 : vector<16x256xf32> to vector<1x16x256xf32>
    tpu.vector_store %arg9[%c0_21, %c0_22, %c0_23], %49 {strides = array<i32>} : memref<1x16x256xf32, #tpu.memory_space<vmem>>, vector<1x16x256xf32>,
    return
  }
  func.func @transform_0(%arg0: i32, %arg1: i32) -> (i32, i32, i32) {
    %c0_i32 = arith.constant 0 : i32
    %c0_i32_0 = arith.constant 0 : i32
    return %arg0, %c0_i32, %arg1 : i32, i32, i32
  }
  func.func @transform_1(%arg0: i32, %arg1: i32) -> (i32, i32, i32) {
    %c0_i32 = arith.constant 0 : i32
    %c0_i32_0 = arith.constant 0 : i32
    return %arg0, %c0_i32, %arg1 : i32, i32, i32
  }
  func.func @transform_2(%arg0: i32, %arg1: i32) -> (i32, i32, i32) {
    %c0_i32 = arith.constant 0 : i32
    %c0_i32_0 = arith.constant 0 : i32
    return %arg0, %c0_i32, %arg1 : i32, i32, i32
  }
  func.func @transform_3(%arg0: i32, %arg1: i32) -> (i32, i32) {
    %c0_i32 = arith.constant 0 : i32
    %c0_i32_0 = arith.constant 0 : i32
    %c0_i32_1 = arith.constant 0 : i32
    return %c0_i32, %c0_i32_0 : i32, i32
  }
  func.func @transform_4(%arg0: i32, %arg1: i32) -> (i32, i32) {
    %c0_i32 = arith.constant 0 : i32
    %c0_i32_0 = arith.constant 0 : i32
    %c0_i32_1 = arith.constant 0 : i32
    return %c0_i32, %c0_i32_0 : i32, i32
  }
  func.func @transform_5(%arg0: i32, %arg1: i32) -> (i32, i32) {
    %c0_i32 = arith.constant 0 : i32
    %c0_i32_0 = arith.constant 0 : i32
    %c0_i32_1 = arith.constant 0 : i32
    return %c0_i32, %c0_i32_0 : i32, i32
  }
  func.func @transform_6(%arg0: i32, %arg1: i32) -> (i32, i32) {
    %c0_i32 = arith.constant 0 : i32
    %c0_i32_0 = arith.constant 0 : i32
    %c0_i32_1 = arith.constant 0 : i32
    return %c0_i32, %c0_i32_0 : i32, i32
  }
  func.func @transform_7(%arg0: i32, %arg1: i32) -> (i32, i32, i32) {
    %c0_i32 = arith.constant 0 : i32
    %c0_i32_0 = arith.constant 0 : i32
    return %arg0, %c0_i32, %arg1 : i32, i32, i32
  }
}

</mosaic_0001>

<bundles_post_ra>
// kernel: _ddfm_impl.1
= control target key start
LH: loop header
LB: loop body
LE: loop exit
PB: predicated region body
PF: predicated region fallthrough
CT: control target
= control target key end

     0   :  { %s862_s24 = smov 0   ;;  %s864_s25 = smov 0   ;;  %s928_s0 = inlined_call_operand.vmem [shape: bf16[2,8,256], index: 0, kind: input, shape index: {}]   ;;  %s929_s1 = inlined_call_operand.vmem [shape: bf16[2,8,256], index: 1, kind: input, shape index: {}]   ;;  %s930_s2 = inlined_call_operand.vmem [shape: bf16[2,8,256], index: 2, kind: input, shape index: {}]   ;;  %s931_s3 = inlined_call_operand.vmem [shape: f32[8,4], index: 3, kind: input, shape index: {}]   ;;  %s932_s4 = inlined_call_operand.vmem [shape: bf16[16,8], index: 4, kind: input, shape index: {}]   ;;  %s933_s5 = inlined_call_operand.vmem [shape: bf16[16,8], index: 5, kind: input, shape index: {}]   ;;  %s934_s6 = inlined_call_operand.vmem [shape: f32[16,1], index: 6, kind: input, shape index: {}]   ;;  %s935_s7 = inlined_call_operand.vmem [shape: f32[2,16,256], index: 7, kind: output, shape index: {}]  }
   0x1   :  { %s866_s26 = smov 0  }
   0x2 LB: > { %s29_s27 = sadd.s32 1, %s812_s25  ;;  %p723_p0 = scmp.ge.s32.totalorder %s816_s26, 1  ;;  %s816_s26 = sphi %s866_s26, %s17_s26   ;;  %s812_s25 = sphi %s864_s25, %s937_s25   ;;  %s808_s24 = sphi %s862_s24, %s936_s24  }
   0x3   : > { %p31_p1 = scmp.ge.s32.totalorder %s29_s27, 2  ;;  %p292_p2 = scmp.lt.s32.totalorder %s816_s26, 3 }
   0x5   : > { %s939_s27 = smov (%p31_p1, %s29_s27), 0  ;;  %p293_p3 = pnand %p723_p0, %p292_p2 }
   0x6   : > { %v391_v0 = vld [vmem:[%s931_s3] sm:$0xff] (!%p293_p3)  ;;  %v818_v1 = vmov (!%p293_p3), 0   ;;  %v819_v2 = vmov (!%p293_p3), 1   ;;  %v820_v3 = vmov (!%p293_p3), 2   ;;  %v821_v4 = vmov (!%p293_p3), 3   ;;  %v393_v6 = vld [vmem:[%s934_s6 + $0x8] sm:$0xff] (!%p293_p3) }
   0x7   : > { %296 = sbr.rel (%p293_p3) target bundleno = 373 (0x175), region = 48  ;;  %778 = vset.pattern.permute.xlu0 (!%p293_p3), %v818_v1  ;;  %780 = vset.pattern.permute.xlu1 (!%p293_p3), %v819_v2  ;;  %v392_v5 = vld [vmem:[%s934_s6] sm:$0xff] (!%p293_p3)  ;;  %p351_p4 = scmp.lt.s32.totalorder (!%p293_p3), %s808_s24, 1  ;;  %vm471_vm0 = vcmask (!%p293_p3), 1043456   ;;  %vm467_vm1 = vcmask (!%p293_p3), 64512  }
   0x8   : > { %431 = vperm.xlu0 (!%p293_p3), %778, %v391_v0   ;;  %437 = vperm.xlu1 (!%p293_p3), %780, %v391_v0   ;;  %v784_v51 = vld [vmem:[%s932_s4] sm:$0xff] (!%p293_p3)  }
   0x9   : > { %567 = vmatprep.mubr.bf16.mxu0 (!%p293_p3), %v818_v1  ;;  %510 = vmatprep.mubr.bf16.mxu1 (!%p293_p3), %v818_v1  ;;  %v785_v57 = vld [vmem:[%s933_s5] sm:$0xff] (!%p293_p3)  }
   0xc   : > { %779 = vset.pattern.permute.xlu0 (!%p293_p3), %v820_v3  ;;  %781 = vset.pattern.permute.xlu1 (!%p293_p3), %v821_v4 }
   0xd   : > { %447 = vperm.xlu0 (!%p293_p3), %779, %v391_v0   ;;  %453 = vperm.xlu1 (!%p293_p3), %781, %v391_v0  }
   0xe   : > { %s941_s24 = smov (!%p351_p4, %s808_s24), 1 }
   0xf   : > { %s742_s11 = sshll.u32 %s941_s24, 3  ;;  %s745_s29 = sshll.u32 %s941_s24, 5 }
  0x10   : > { %s378_s14 = scalar_lea.vmem %s930_s2, %s742_s11  ;;  %s368_s17 = scalar_lea.vmem %s929_s1, %s742_s11 }
  0x11   : > { %782 = vset.pattern.permute.xlu1 %v818_v1  ;;  %783 = vset.pattern.permute.xlu0 %v818_v1  ;;  %v404_v7 = vld [vmem:[%s378_s14] sm:$0xff]  ;;  %s358_s20 = scalar_lea.vmem %s928_s0, %s742_s11  ;;  %s388_s9 = scalar_lea.vmem %s935_s7, %s745_s29 }
  0x12   : > { %580 = vperm.xlu1 %782, %v392_v5   ;;  %585 = vperm.xlu0 %783, %v393_v6   ;;  %v405_v8 = vunpack.c.l.bf16 %v404_v7  ;;  %v406_v9 = vunpack.c.h.bf16 %v404_v7  ;;  %v401_v18 = vld [vmem:[%s368_s17] sm:$0xff] }
  0x13   : > { %v402_v19 = vunpack.c.l.bf16 %v401_v18  ;;  %v403_v20 = vunpack.c.h.bf16 %v401_v18  ;;  %v398_v23 = vld [vmem:[%s358_s20] sm:$0xff] }
  0x14   : > { %v732_v10 = vmul.f32 -1.442695, %v405_v8  ;;  %v733_v11 = vmul.f32 -1.442695, %v406_v9  ;;  %v399_v24 = vunpack.c.l.bf16 %v398_v23  ;;  %v400_v25 = vunpack.c.h.bf16 %v398_v23 }
  0x16   : > { %786 = vpow2.f32 %v732_v10 }
  0x17   : > { %788 = vpow2.f32 %v733_v11 }
  0x20   : > { %v787_v12 = vpop.eup %786 }
  0x21   : > { %v789_v13 = vpop.eup %788  ;;  %v413_v14 = vadd.f32 1.0, %v787_v12 }
  0x22   : > { %v414_v15 = vadd.f32 1.0, %v789_v13 }
  0x23   : > { %790 = vrcp.f32 %v413_v14 }
  0x24   : > { %792 = vrcp.f32 %v414_v15 }
  0x2d   : > { %v791_v16 = vpop.eup %790 }
  0x2e   : > { %v793_v17 = vpop.eup %792  ;;  %v419_v21 = vsub.f32 1.0, %v791_v16  ;;  %v425_v30 = vmul.f32 %v791_v16, %v399_v24 }
  0x2f   : > { %v420_v22 = vsub.f32 1.0, %v793_v17  ;;  %v426_v31 = vmul.f32 %v793_v17, %v400_v25 }
  0x30   : > { %v421_v26 = vmul.f32 %v419_v21, %v402_v19  ;;  %v427_v36 = vadd.f32 %v425_v30, %v402_v19 }
  0x31   : > { %v422_v27 = vmul.f32 %v420_v22, %v403_v20  ;;  %v428_v37 = vadd.f32 %v426_v31, %v403_v20 }
  0x32   : > { %v423_v28 = vadd.f32 %v421_v26, %v399_v24 }
  0x33   : > { %v424_v29 = vadd.f32 %v422_v27, %v400_v25 }
  0x87   : > { %v432_v32 = vpop.permute.xlu0 %431  ;;  %v438_v33 = vpop.permute.xlu1 %437 }
  0x88   : > { %v434_v34 = vmul.f32 %v432_v32, %v423_v28  ;;  %v435_v35 = vmul.f32 %v432_v32, %v424_v29 }
  0x8a   : > { %v440_v38 = vadd.f32 %v438_v33, %v434_v34  ;;  %v441_v39 = vadd.f32 %v438_v33, %v435_v35 }
  0x8c   : > { %v442_v40 = vmax.f32 %v440_v38, 0.0  ;;  %v448_v41 = vpop.permute.xlu0 %447  ;;  %v454_v42 = vpop.permute.xlu1 %453  ;;  %v443_v43 = vmax.f32 %v441_v39, 0.0 }
  0x8d   : > { %v450_v44 = vmul.f32 %v448_v41, %v427_v36  ;;  %v451_v45 = vmul.f32 %v448_v41, %v428_v37 }
  0x8e   : > { %v445_v46 = vpack.c.bf16 %v443_v43, %v443_v43  ;;  %v444_v47 = vpack.c.bf16 %v442_v40, %v442_v40 }
  0x8f   : > { %v456_v48 = vadd.f32 %v454_v42, %v450_v44  ;;  %v457_v49 = vadd.f32 %v454_v42, %v451_v45 }
  0x90   : > { %738 = vmatprep.subr.msk.bf16.mxu0 %vm471_vm0, %v445_v46  ;;  %v530_v50 = vsel %vm471_vm0, %v444_v47, 0 }
  0x91   : > { %v458_v52 = vmax.f32 %v456_v48, 0.0  ;;  %536 = vmatpush1.bf16.msra.mxu0 %v530_v50  ;;  %v459_v53 = vmax.f32 %v457_v49, 0.0  ;;  %v581_v63 = vpop.permute.xlu1 %580  ;;  %v586_v4 = vpop.permute.xlu0 %585 }
  0x93   : > { %v461_v54 = vpack.c.bf16 %v459_v53, %v459_v53  ;;  %v460_v55 = vpack.c.bf16 %v458_v52, %v458_v52 }
  0x94   : > { %739 = vmatmul.mubr.msk.bf16.vlgmr.msra.gmra.mrb[0].mxu0 %vm467_vm1, %v784_v51 }
  0x95   : > { %735 = vmatprep.subr.msk.bf16.mxu1 %vm471_vm0, %v461_v54  ;;  %v473_v56 = vsel %vm471_vm0, %v460_v55, 0 }
  0x96   : > { %479 = vmatpush1.bf16.msra.mxu1 %v473_v56 }
  0x99   : > { %736 = vmatmul.mubr.msk.bf16.vlgmr.msra.gmra.mrb[0].mxu1 %vm467_vm1, %v785_v57 }
 0x167   : > { %v569_v58 = vpop.f32.mrb[0].mxu0 }
 0x168   : > { %v571_v59 = vpop.f32.mrb[1].mxu0 }
 0x169   : > { %v573_v60 = vpop.f32.mrb[2].mxu0 }
 0x16a   : > { %v575_v61 = vpop.f32.mrb[3].mxu0 }
 0x16c   : > { %v512_v62 = vpop.f32.mrb[0].mxu1 }
 0x16d   : > { %v570_v0 = vadd.f32 %v569_v58, %v512_v62  ;;  %v514_v1 = vpop.f32.mrb[1].mxu1 }
 0x16e   : > { %v572_v2 = vadd.f32 %v571_v59, %v514_v1  ;;  %v516_v3 = vpop.f32.mrb[2].mxu1 }
 0x16f   : > { %v588_v5 = vadd.f32 %v581_v63, %v570_v0  ;;  %v574_v6 = vadd.f32 %v573_v60, %v516_v3  ;;  %v518_v7 = vpop.f32.mrb[3].mxu1 }
 0x170   : > { %v589_v8 = vadd.f32 %v581_v63, %v572_v2  ;;  %v576_v9 = vadd.f32 %v575_v61, %v518_v7 }
 0x171   : > { %592 = vst [vmem:[%s388_s9] sm:$0xff] %v588_v5  ;;  %v590_v10 = vadd.f32 %v586_v4, %v574_v6 }
 0x172   : > { %593 = vst [vmem:[%s388_s9 + $0x8] sm:$0xff] %v589_v8  ;;  %v591_v11 = vadd.f32 %v586_v4, %v576_v9 }
 0x173   : > { %594 = vst [vmem:[%s388_s9 + $0x10] sm:$0xff] %v590_v10 }
 0x174   : > { %595 = vst [vmem:[%s388_s9 + $0x18] sm:$0xff] %v591_v11 }
 0x175 PF: > { %s17_s26 = sadd.s32 1, %s816_s26   ;;  %s936_s24 = smov %s812_s25 }
 0x176   : > { %p14_p5 = scmp.ge.s32.totalorder %s17_s26, 4   ;;  %s937_s25 = smov %s939_s27 }
 0x178   :  { %16 = sbr.rel (!%p14_p5) target bundleno = 2 (0x2), region = 84 }

</bundles_post_ra>
